<compile_context>
chip_gen: v6e
topology: v6e:2x2x1
jax: 0.10.0
libtpu: 0.0.40
codegen_flags: <defaults>
</compile_context>

<pallas_src>
import jax
import jax.numpy as jnp
from jax.experimental import pallas as pl
from jax.experimental.pallas import tpu as pltpu


def pixel_attention_kernel(x_ref, w_ref, o_ref):
    """x_ref: (1, C, TN), w_ref: (C_out, C_in), o_ref: (1, C, TN)."""
    x = x_ref[0]                                               # (C, TN)
    y = jnp.dot(w_ref[...], x, preferred_element_type=jnp.float32)
    o_ref[0] = (x * jax.nn.sigmoid(y)).astype(o_ref.dtype)


def pixel_attention_bias_kernel(x_ref, w_ref, b_ref, o_ref):
    """Same as above plus a per-output-channel bias b_ref: (C, 1)."""
    x = x_ref[0]                                               # (C, TN)
    y = jnp.dot(w_ref[...], x, preferred_element_type=jnp.float32)
    y = y + b_ref[...]                                         # broadcast over TN lanes
    o_ref[0] = (x * jax.nn.sigmoid(y)).astype(o_ref.dtype)


def _pick_spatial_tile(hw: int, c: int) -> int:
    """Largest divisor of hw that is a multiple of 128 and fits the VMEM budget.

    Budget: keep one (c, tn) f32 tile at ~<=4 MiB so x-in (x2 buffers), out
    (x2 buffers) and the weight comfortably fit the default scoped-VMEM limit.
    Falls back to the full spatial extent if hw has no suitable divisor
    (then the block equals the full array dim, which Pallas always accepts).
    """
    budget_elems = (4 * 1024 * 1024) // 4            # 4 MiB of f32
    cap = max(128, min(8192, (budget_elems // max(c, 1)) // 128 * 128))
    if hw <= cap:
        return hw
    for t in range(cap, 127, -128):
        if hw % t == 0:
            return t
    return hw


def pixel_attention(x_nchw, weight, bias=None):
    """PixelAttention forward.

    x_nchw: (b, c, h, w) float32 (PyTorch NCHW layout).
    weight: (c_out, c_in) or (c_out, c_in, 1, 1) -- the Conv2d1x1 weight.
    bias:   optional (planes,) vector (module default is bias=False).
    """
    b, c, h, w = x_nchw.shape
    if weight.ndim == 4:                          # PyTorch conv weight layout
        weight = weight.reshape(weight.shape[0], weight.shape[1])
    hw = h * w
    x2 = x_nchw.reshape(b, c, hw)                 # free reshape (contiguous)
    tn = _pick_spatial_tile(hw, c)
    grid = (b, hw // tn)

    x_spec = pl.BlockSpec((1, c, tn), lambda i, j: (i, 0, j))
    w_spec = pl.BlockSpec((c, c), lambda i, j: (0, 0))
    out_spec = pl.BlockSpec((1, c, tn), lambda i, j: (i, 0, j))
    cparams = pltpu.CompilerParams(dimension_semantics=("parallel", "parallel"))

    if bias is None:
        out = pl.pallas_call(
            pixel_attention_kernel,
            out_shape=jax.ShapeDtypeStruct((b, c, hw), x_nchw.dtype),
            grid=grid,
            in_specs=[x_spec, w_spec],
            out_specs=out_spec,
            compiler_params=cparams,
        )(x2, weight)
    else:
        b_spec = pl.BlockSpec((c, 1), lambda i, j: (0, 0))
        out = pl.pallas_call(
            pixel_attention_bias_kernel,
            out_shape=jax.ShapeDtypeStruct((b, c, hw), x_nchw.dtype),
            grid=grid,
            in_specs=[x_spec, w_spec, b_spec],
            out_specs=out_spec,
            compiler_params=cparams,
        )(x2, weight, bias.reshape(c, 1))

    return out.reshape(b, c, h, w)


def reference(x, weight, bias=None):
    """Pure-JAX transcription of the PyTorch forward (NCHW)."""
    if weight.ndim == 4:
        weight = weight.reshape(weight.shape[0], weight.shape[1])
    y = jnp.einsum('oc,bchw->bohw', weight, x)
    if bias is not None:
        y = y + bias[None, :, None, None]
    return x * jax.nn.sigmoid(y)


if __name__ == "__main__":
    batch, planes, h, w = 2, 32, 16, 16

    key = jax.random.PRNGKey(0)
    kx, kw, kb = jax.random.split(key, 3)
    x = jax.random.normal(kx, (batch, planes, h, w), jnp.float32)
    # Conv2d1x1 weight (out_channels, in_channels, 1, 1) like PyTorch.
    weight = 0.1 * jax.random.normal(kw, (planes, planes, 1, 1), jnp.float32)
    bias = 0.1 * jax.random.normal(kb, (planes,), jnp.float32)

    # Module default: bias=False.
    out = jax.block_until_ready(pixel_attention(x, weight))
    ref = reference(x, weight)
    assert out.shape == x.shape
    err = float(jnp.max(jnp.abs(out - ref)))
    assert err < 1e-5, f"bias=False max abs error vs reference: {err}"

    # bias=True path (module supports it via the constructor flag).
    out_b = jax.block_until_ready(pixel_attention(x, weight, bias))
    ref_b = reference(x, weight, bias)
    err_b = float(jnp.max(jnp.abs(out_b - ref_b)))
    assert err_b < 1e-5, f"bias=True max abs error vs reference: {err_b}"

    print("KERNEL_OK")
</pallas_src>

<mosaic_0001>
module attributes {stable_mosaic.version = 11 : i64} {
  func.func @pixel_attention_kernel(%arg0: i32, %arg1: i32, %arg2: memref<1x32x256xf32, #tpu.memory_space<vmem>>, %arg3: memref<32x32xf32, #tpu.memory_space<vmem>>, %arg4: memref<1x32x256xf32, #tpu.memory_space<vmem>>) attributes {dimension_semantics = [#tpu.dimension_semantics<parallel>, #tpu.dimension_semantics<parallel>], iteration_bounds = array<i64: 2, 1>, scalar_prefetch = 0 : i64, scratch_operands = 0 : i64, tpu.core_type = #tpu.core_type<tc>, window_params = [{transform_indices = @transform_0, window_bounds = array<i64: 1, 32, 256>}, {pipeline_mode = #tpu.pipeline_mode<synchronous>, transform_indices = @transform_1, window_bounds = array<i64: 32, 32>}, {transform_indices = @transform_2, window_bounds = array<i64: 1, 32, 256>}]} {
    %c0 = arith.constant 0 : index
    %c0_0 = arith.constant 0 : index
    %c0_1 = arith.constant 0 : index
    %0 = vector.load %arg2[%c0, %c0_0, %c0_1] : memref<1x32x256xf32, #tpu.memory_space<vmem>>, vector<1x32x256xf32>
    %1 = vector.shape_cast %0 : vector<1x32x256xf32> to vector<32x256xf32>
    %c0_2 = arith.constant 0 : index
    %c0_3 = arith.constant 0 : index
    %2 = vector.load %arg3[%c0_2, %c0_3] : memref<32x32xf32, #tpu.memory_space<vmem>>, vector<32x32xf32>
    %cst = arith.constant dense<0.000000e+00> : vector<32x256xf32>
    %3 = tpu.matmul %2, %1, %cst {dimension_numbers = #tpu.dot_dimension_numbers<[1], [0], [0], [1], [0, 0, 1, 1], [], []>} : vector<32x32xf32>, vector<32x256xf32>, vector<32x256xf32> -> vector<32x256xf32>
    %4 = arith.negf %3 : vector<32x256xf32>
    %5 = math.exp %4 : vector<32x256xf32>
    %cst_4 = arith.constant 1.000000e+00 : f32
    %6 = vector.broadcast %cst_4 : f32 to vector<32x256xf32>
    %7 = arith.addf %6, %5 : vector<32x256xf32>
    %8 = arith.divf %6, %7 : vector<32x256xf32>
    %9 = arith.mulf %1, %8 : vector<32x256xf32>
    %c0_5 = arith.constant 0 : index
    %c0_6 = arith.constant 0 : index
    %c0_7 = arith.constant 0 : index
    %10 = vector.load %arg4[%c0_5, %c0_6, %c0_7] : memref<1x32x256xf32, #tpu.memory_space<vmem>>, vector<1x32x256xf32>
    %11 = vector.shape_cast %10 : vector<1x32x256xf32> to vector<32x256xf32>
    %12 = vector.shape_cast %9 : vector<32x256xf32> to vector<1x32x256xf32>
    tpu.vector_store %arg4[%c0_5, %c0_6, %c0_7], %12 {strides = array<i32>} : memref<1x32x256xf32, #tpu.memory_space<vmem>>, vector<1x32x256xf32>,
    return
  }
  func.func @transform_0(%arg0: i32, %arg1: i32) -> (i32, i32, i32) {
    %c0_i32 = arith.constant 0 : i32
    %c0_i32_0 = arith.constant 0 : i32
    return %arg0, %c0_i32, %arg1 : i32, i32, i32
  }
  func.func @transform_1(%arg0: i32, %arg1: i32) -> (i32, i32) {
    %c0_i32 = arith.constant 0 : i32
    %c0_i32_0 = arith.constant 0 : i32
    %c0_i32_1 = arith.constant 0 : i32
    return %c0_i32, %c0_i32_0 : i32, i32
  }
  func.func @transform_2(%arg0: i32, %arg1: i32) -> (i32, i32, i32) {
    %c0_i32 = arith.constant 0 : i32
    %c0_i32_0 = arith.constant 0 : i32
    return %arg0, %c0_i32, %arg1 : i32, i32, i32
  }
}

</mosaic_0001>

<bundles_post_ra>
// kernel: tpu_custom_call.1
= control target key start
LH: loop header
LB: loop body
LE: loop exit
PB: predicated region body
PF: predicated region fallthrough
CT: control target
= control target key end

     0   :  { %7 = vsyncpa [#allocation3], 0  ;;  %s1029_s0 = inlined_call_operand.hbm [shape: f32[2,32,256], index: 0, kind: input, shape index: {}]   ;;  %s1030_s1 = inlined_call_operand.hbm [shape: f32[32,32], index: 1, kind: input, shape index: {}]   ;;  %s1031_s2 = inlined_call_operand.hbm [shape: f32[2,32,256], index: 2, kind: output, shape index: {}]  }
   0x1   :  { %9 = vsyncpa [#allocation3 + $0x1], 0 }
   0x2   :  { %10 = vsyncpa [#allocation6], 0 }
   0x3   :  { %11 = vsyncpa [#allocation4], 0 }
   0x4   :  { %13 = vsyncpa [#allocation4 + $0x1], 0  ;;  %s804_s9 = smov 0   ;;  %s806_s10 = smov 0  }
   0x5   :  { %s808_s11 = smov 0   ;;  %s810_s12 = smov 0  }
   0x6   :  { %s812_s13 = smov 0   ;;  %s814_s14 = smov 0  }
   0x7 LB: > { %s488_s15 = sadd.s32 4294967295, %s777_s14   ;;  %s489_s16 = sadd.s32 4294967294, %s777_s14   ;;  %s777_s14 = sphi %s814_s14, %s19_s14   ;;  %s773_s13 = sphi %s812_s13, %s1049_s13   ;;  %s769_s12 = sphi %s810_s12, %s1048_s12   ;;  %s765_s11 = sphi %s808_s11, %s1047_s11   ;;  %s761_s10 = sphi %s806_s10, %s1046_s10   ;;  %s757_s9 = sphi %s804_s9, %s1045_s9  }
   0x8   : > { %p53_p0 = scmp.ne.s32.totalorder %s761_s10, %s757_s9  ;;  %p838_p1 = scmp.eq.s32.totalorder %s488_s15, 0 }
   0x9   : > { %p842_p2 = scmp.eq.s32.totalorder %s488_s15, 1  ;;  %p106_p3 = scmp.eq.s32.totalorder %s489_s16, 1 }
   0xa   : > { %p848_p4 = por %p838_p1, %p53_p0  ;;  %p490_p5 = scmp.ge.s32.totalorder %s777_s14, 1 }
   0xb   : > { %p853_p6 = por %p106_p3, %p53_p0  ;;  %p113_p7 = scmp.lt.s32.totalorder %s777_s14, 3 }
   0xc   : > { %s1035_s19 = scalar_select %p848_p4, 1, 0 }
   0xd   : > { %s1036_s20 = scalar_select %p853_p6, 1, 0 }
   0xe   : > { %p858_p8 = pnand %p490_p5, %p113_p7  ;;  %s779_s22 = smov [#allocation5]  }
   0xf   : > { %s125_s23 = sshll.u32 %s779_s22, 4  ;;  %s31_s25 = sadd.s32 1, %s773_s13  ;;  %s126_s23 = int_to_ptr.vmem [resolvable:$true] %s125_s23 }
  0x10   : > { %p535_p9 = pneg %p858_p8  ;;  %s650_s26 = scalar_lea.vmem %s126_s23, 512 }
  0x11   : > { %p651_p13 = scmp.ne.s32.totalorder %s126_s23, %s650_s26  ;;  %p658_p5 = scmp.lt.s32.totalorder %s126_s23, %s126_s23 }
  0x12   : > { %p867_p11 = pnand %p535_p9, %p838_p1  ;;  %p659_p7 = scmp.lt.s32.totalorder %s650_s26, %s650_s26 }
  0x14   : > { %p641_p12 = pneg %p867_p11  ;;  %p660_p6 = por %p659_p7, %p658_p5 }
  0x16   : > { %p653_p0 = pnand %p651_p13, %p641_p12 }
  0x18   : > { %p654_p3 = pneg %p653_p0 }
  0x1a   : > { %p661_p4 = pnand %p660_p6, %p654_p3 }
  0x1c   : > { %664 = shalt.err (!%p661_p4)
}
  0x1d   : > { %s780_s27 = smov 128   ;;  %s781_s28 = smov 8  }
  0x1e   : > { %538 = dma.hbm_to_vmem [thread:$0]  (!%p867_p11), %s1030_s1, 512, %s126_s23, [#allocation6], %s780_s27, %s780_s27, %s781_s28  }
  0x1f   : > { %p33_p6 = scmp.ge.s32.totalorder %s31_s25, 2  ;;  %s40_s3 = sadd.s32 1, %s765_s11 }
  0x20   : > { %p47_p4 = scmp.ne.s32.totalorder %s765_s11, %s761_s10  ;;  %p48_p9 = scmp.eq.s32.totalorder %s777_s14, 0 }
  0x21   : > { %s1051_s25 = smov (%p33_p6, %s31_s25), 0  ;;  %p548_p0 = scmp.lt.s32.totalorder %s777_s14, 2 }
  0x22   : > { %p885_p12 = por %p48_p9, %p47_p4  ;;  %p891_p13 = por %p842_p2, %p47_p4 }
  0x23   : > { %s35_s6 = ssub.s32 %s773_s13, %s1051_s25  ;;  %s139_s7 = sand.u32 1, %s765_s11  }
  0x24   : > { %p38_p11 = scmp.eq.s32.totalorder %s35_s6, 0  ;;  %s493_s8 = sshll.u32 %s139_s7, 6 }
  0x25   : > { %s517_s16 = sshll.u32 %s773_s13, 10  ;;  %s143_s26 = scalar_lea.vmem [#allocation2], %s493_s8 }
  0x26   : > { %s900_s15 = scalar_select %p38_p11, %s765_s11, %s40_s3  }
  0x27   : > { %s151_s24 = scalar_lea.hbm %s1029_s0, %s517_s16  ;;  %s152_s27 = sshll.u32 %s143_s26, 4  ;;  %s153_s27 = int_to_ptr.vmem [resolvable:$true] %s152_s27 }
  0x28   : > { %p908_p2 = pnand %p548_p0, %p885_p12  ;;  %s140_s28 = scalar_lea.sflag [#allocation3], %s139_s7 }
  0x29   : > { %s678_s29 = scalar_lea.vmem %s153_s27, 1024  ;;  %s782_s30 = smov [#allocation2]  }
  0x2a   : > { %p667_p3 = pneg %p908_p2  ;;  %p679_p5 = scmp.ne.s32.totalorder %s153_s27, %s678_s29 }
  0x2b   : > { %s683_s3 = sshll.u32 %s782_s30, 4  ;;  %s684_s3 = int_to_ptr.vmem [resolvable:$false] %s683_s3 }
  0x2c   : > { %p681_p7 = pnand %p679_p5, %p667_p3  ;;  %s685_s6 = scalar_lea.vmem %s684_s3, 2048 }
  0x2d   : > { %p686_p4 = scmp.lt.s32.totalorder %s153_s27, %s684_s3  ;;  %p687_p9 = scmp.lt.s32.totalorder %s685_s6, %s678_s29 }
  0x2e   : > { %p682_p6 = pneg %p681_p7 }
  0x2f   : > { %p688_p11 = por %p687_p9, %p686_p4 }
  0x31   : > { %p689_p10 = pnand %p688_p11, %p682_p6 }
  0x33   : > { %692 = shalt.err (!%p689_p10)
}
  0x34   : > { %s783_s4 = smov 256   ;;  %s784_s8 = smov 16  }
  0x35   : > { %542 = dma.hbm_to_vmem [thread:$0]  (!%p908_p2), %s151_s24, 1024, %s153_s27, %s140_s28, %s783_s4, %s783_s4, %s784_s8  }
  0x36   : > { %164 = sbr.rel (%p858_p8) target bundleno = 320 (0x140), region = 28  ;;  %s919_s7 = sand.u32 (!%p858_p8), 1, %s761_s10  }
  0x37   : > { %s497_s16 = sshll.u32 (!%p858_p8), %s919_s7, 6  ;;  %s167_s22 = scalar_lea.sflag (!%p858_p8), [#allocation3], %s919_s7 }
  0x38   : > { %s170_s23 = scalar_lea.vmem (!%p858_p8), [#allocation2], %s497_s16  ;;  %p1042_p10 = scmp.ne.s32.totalorder (!%p858_p8), %s1035_s19, 0 }
  0x3b   : > { %744 = dma.done.wait (%p1042_p10), %s167_s22, 1024  }
  0x3c   : > { %746 = vsyncadd (%p1042_p10), %s167_s22, 4294966272 }
  0x3d   : > { %748 = dma.done.wait (%p838_p1), [#allocation6], 512  }
  0x3e   : > { %750 = vsyncadd (%p838_p1), [#allocation6], 4294966784  ;;  %v785_v0 = vmov 0.0   ;;  %v933_v1 = vld [vmem:[%s170_s23 + $0x38] sm:$0xff]  ;;  %v935_v2 = vld [vmem:[%s170_s23 + $0x30] sm:$0xff]  ;;  %vm209_vm0 = vcmask 261120  }
  0x3f   : > { %286 = vmatprep.mubr.f32.mxu0 %v785_v0  ;;  %298 = vmatprep.mubr.f32.mxu1 %v785_v0  ;;  %v937_v3 = vld [vmem:[%s170_s23 + $0x28] sm:$0xff]  ;;  %v941_v4 = vld [vmem:[%s170_s23 + $0x20] sm:$0xff]  ;;  %v945_v5 = vld [vmem:[%s170_s23 + $0x18] sm:$0xff]  ;;  %s194_s17 = scalar_lea.vmem [#allocation7], %s497_s16  ;;  %s518_s19 = sshll.u32 %s769_s12, 10 }
  0x40   : > { %246 = vmatprep.subr.mxu0 %v933_v1  ;;  %519 = vmatprep.subr.mxu1 %v933_v1  ;;  %v949_v6 = vld [vmem:[%s170_s23 + $0x10] sm:$0xff]  ;;  %v953_v7 = vld [vmem:[%s170_s23 + $0x8] sm:$0xff]  ;;  %v957_v8 = vld [vmem:[%s170_s23] sm:$0xff]  ;;  %s391_s21 = sshll.u32 %s194_s17, 4  ;;  %s978_s27 = scalar_lea.hbm %s1031_s2, %s518_s19  ;;  %s980_s21 = int_to_ptr.vmem [resolvable:$true] %s391_s21 }
  0x41   : > { %247 = vmatpush1.msra.mxu0 %v935_v2  ;;  %523 = vmatpush1.msra.mxu1 %v935_v2  ;;  %v205_v9 = vld [vmem:[#allocation5] sm:$0xff]  ;;  %v207_v10 = vld [vmem:[#allocation5 + $0x10] sm:$0xff]  ;;  %v206_v11 = vld [vmem:[#allocation5 + $0x8] sm:$0xff]  ;;  %s376_s12 = scalar_lea.sflag [#allocation4], %s919_s7  ;;  %s693_s18 = scalar_lea.vmem %s980_s21, 1024 }
  0x42   : > { %248 = vmatprep.subr.mxu0 %v937_v3  ;;  %520 = vmatprep.subr.mxu1 %v937_v3  ;;  %v208_v12 = vld [vmem:[#allocation5 + $0x18] sm:$0xff]  ;;  %p694_p1 = scmp.ne.s32.totalorder %s980_s21, %s693_s18  ;;  %s786_s28 = smov [#allocation7]  }
  0x43   : > { %249 = vmatpush1.msra.mxu0 %v941_v4  ;;  %524 = vmatpush1.msra.mxu1 %v941_v4  ;;  %s697_s29 = sshll.u32 %s786_s28, 4  ;;  %s698_s29 = int_to_ptr.vmem [resolvable:$false] %s697_s29 }
  0x44   : > { %250 = vmatprep.subr.mxu0 %v945_v5  ;;  %521 = vmatprep.subr.mxu1 %v945_v5  ;;  %p695_p8 = pnand %p694_p1, %p891_p13  ;;  %s699_s30 = scalar_lea.vmem %s698_s29, 2048 }
  0x45   : > { %251 = vmatpush1.msra.mxu0 %v949_v6  ;;  %525 = vmatpush1.msra.mxu1 %v949_v6  ;;  %p700_p0 = scmp.lt.s32.totalorder %s980_s21, %s698_s29  ;;  %p701_p2 = scmp.lt.s32.totalorder %s699_s30, %s693_s18 }
  0x46   : > { %252 = vmatprep.subr.mxu0 %v953_v7  ;;  %522 = vmatprep.subr.mxu1 %v953_v7  ;;  %p696_p12 = pneg %p695_p8 }
  0x47   : > { %253 = vmatpush1.msra.mxu0 %v957_v8  ;;  %526 = vmatpush1.msra.mxu1 %v957_v8  ;;  %p702_p3 = por %p701_p2, %p700_p0 }
  0x48   : > { %500 = vmatmul.mubr.msk.f32.vlgmr.msra.gmra.mxu0 %vm209_vm0, %v205_v9  ;;  %502 = vmatmul.mubr.msk.f32.vlgmr.msra.gmra.mxu1 %vm209_vm0, %v207_v10 }
  0x49   : > { %292 = vmatprep.mubr.f32.mxu0 %v785_v0  ;;  %304 = vmatprep.mubr.f32.mxu1 %v785_v0  ;;  %p703_p5 = pnand %p702_p3, %p696_p12 }
  0x4c   : > { %501 = vmatmul.mubr.msk.f32.gmra.mxu0 %vm209_vm0, %v206_v11  ;;  %503 = vmatmul.mubr.msk.f32.gmra.mxu1 %vm209_vm0, %v208_v12 }
 0x108   : > { %v288_v13 = vpop.f32.mrf.mxu0  ;;  %v300_v14 = vpop.f32.mrf.mxu1 }
 0x109   : > { %v504_v15 = vmul.f32 -1.442695, %v288_v13  ;;  %v508_v16 = vmul.f32 -1.442695, %v300_v14 }
 0x10a   : > { %v290_v17 = vpop.f32.mrf.mxu0  ;;  %v302_v18 = vpop.f32.mrf.mxu1 }
 0x10b   : > { %607 = vpow2.f32 %v504_v15  ;;  %v505_v19 = vmul.f32 -1.442695, %v290_v17  ;;  %v509_v20 = vmul.f32 -1.442695, %v302_v18 }
 0x10c   : > { %609 = vpow2.f32 %v508_v16  ;;  %v294_v21 = vpop.f32.mrf.mxu0  ;;  %v306_v22 = vpop.f32.mrf.mxu1 }
 0x10d   : > { %611 = vpow2.f32 %v505_v19  ;;  %v506_v23 = vmul.f32 -1.442695, %v294_v21  ;;  %v510_v24 = vmul.f32 -1.442695, %v306_v22 }
 0x10e   : > { %613 = vpow2.f32 %v509_v20  ;;  %v296_v25 = vpop.f32.mrf.mxu0  ;;  %v308_v26 = vpop.f32.mrf.mxu1 }
 0x10f   : > { %615 = vpow2.f32 %v506_v23  ;;  %v507_v27 = vmul.f32 -1.442695, %v296_v25  ;;  %v511_v28 = vmul.f32 -1.442695, %v308_v26 }
 0x110   : > { %617 = vpow2.f32 %v510_v24 }
 0x111   : > { %619 = vpow2.f32 %v507_v27 }
 0x112   : > { %621 = vpow2.f32 %v511_v28 }
 0x118   : > { %v608_v29 = vpop.eup %607 }
 0x119   : > { %v610_v30 = vpop.eup %609  ;;  %v335_v31 = vadd.f32 1.0, %v608_v29 }
 0x11a   : > { %v612_v32 = vpop.eup %611  ;;  %v339_v33 = vadd.f32 1.0, %v610_v30 }
 0x11b   : > { %v614_v34 = vpop.eup %613  ;;  %623 = vrcp.f32 %v335_v31  ;;  %v336_v35 = vadd.f32 1.0, %v612_v32 }
 0x11c   : > { %v616_v36 = vpop.eup %615  ;;  %625 = vrcp.f32 %v339_v33  ;;  %v340_v37 = vadd.f32 1.0, %v614_v34 }
 0x11d   : > { %v618_v38 = vpop.eup %617  ;;  %627 = vrcp.f32 %v336_v35  ;;  %v337_v39 = vadd.f32 1.0, %v616_v36 }
 0x11e   : > { %v620_v40 = vpop.eup %619  ;;  %629 = vrcp.f32 %v340_v37  ;;  %v341_v41 = vadd.f32 1.0, %v618_v38 }
 0x11f   : > { %v622_v42 = vpop.eup %621  ;;  %631 = vrcp.f32 %v337_v39  ;;  %v338_v43 = vadd.f32 1.0, %v620_v40 }
 0x120   : > { %633 = vrcp.f32 %v341_v41  ;;  %v342_v44 = vadd.f32 1.0, %v622_v42 }
 0x121   : > { %635 = vrcp.f32 %v338_v43 }
 0x122   : > { %637 = vrcp.f32 %v342_v44 }
 0x128   : > { %v624_v45 = vpop.eup %623 }
 0x129   : > { %v626_v46 = vpop.eup %625  ;;  %v359_v47 = vmul.f32 %v624_v45, %v957_v8 }
 0x12a   : > { %v628_v48 = vpop.eup %627  ;;  %v363_v49 = vmul.f32 %v626_v46, %v941_v4 }
 0x12b   : > { %v630_v50 = vpop.eup %629  ;;  %367 = vst [vmem:[%s194_s17] sm:$0xff] %v359_v47  ;;  %v360_v51 = vmul.f32 %v628_v48, %v953_v7 }
 0x12c   : > { %v632_v52 = vpop.eup %631  ;;  %371 = vst [vmem:[%s194_s17 + $0x20] sm:$0xff] %v363_v49  ;;  %v364_v53 = vmul.f32 %v630_v50, %v937_v3 }
 0x12d   : > { %v634_v54 = vpop.eup %633  ;;  %368 = vst [vmem:[%s194_s17 + $0x8] sm:$0xff] %v360_v51  ;;  %v361_v55 = vmul.f32 %v632_v52, %v949_v6 }
 0x12e   : > { %v636_v56 = vpop.eup %635  ;;  %372 = vst [vmem:[%s194_s17 + $0x28] sm:$0xff] %v364_v53  ;;  %v365_v57 = vmul.f32 %v634_v54, %v935_v2 }
 0x12f   : > { %v638_v58 = vpop.eup %637  ;;  %369 = vst [vmem:[%s194_s17 + $0x10] sm:$0xff] %v361_v55  ;;  %v362_v59 = vmul.f32 %v636_v56, %v945_v5 }
 0x130   : > { %373 = vst [vmem:[%s194_s17 + $0x30] sm:$0xff] %v365_v57  ;;  %v366_v60 = vmul.f32 %v638_v58, %v933_v1 }
 0x131   : > { %370 = vst [vmem:[%s194_s17 + $0x18] sm:$0xff] %v362_v59 }
 0x132   : > { %374 = vst [vmem:[%s194_s17 + $0x38] sm:$0xff] %v366_v60 }
 0x133   : > { %706 = shalt.err (!%p703_p5)
}
 0x134   : > { %s707_s3 = scalar_lea.hbm %s978_s27, 1024  ;;  %s711_s8 = scalar_lea.hbm %s1031_s2, 2048 }
 0x135   : > { %p708_p7 = scmp.ne.s32.totalorder %s978_s27, %s707_s3  ;;  %p712_p9 = scmp.lt.s32.totalorder %s978_s27, %s1031_s2 }
 0x136   : > { %p713_p11 = scmp.lt.s32.totalorder %s711_s8, %s707_s3 }
 0x137   : > { %p709_p6 = pnand %p708_p7, %p891_p13 }
 0x138   : > { %p714_p10 = por %p713_p11, %p712_p9 }
 0x139   : > { %p710_p4 = pneg %p709_p6 }
 0x13b   : > { %p715_p1 = pnand %p714_p10, %p710_p4 }
 0x13d   : > { %718 = shalt.err (!%p715_p1)
}
 0x13e   : > { %s787_s23 = smov 256   ;;  %s788_s17 = smov 16  }
 0x13f   : > { %533 = dma.vmem_to_hbm [thread:$0]  (%p891_p13), %s980_s21, 1024, %s978_s27, %s376_s12, %s787_s23, %s787_s23, %s788_s17  }
 0x140 PF: > { %s406_s19 = sand.u32 1, %s757_s9   ;;  %p1043_p8 = scmp.ne.s32.totalorder %s1036_s20, 0 }
 0x141   : > { %p1044_p12 = scmp.ge.s32.totalorder %s777_s14, 2  ;;  %s407_s24 = scalar_lea.sflag [#allocation4], %s406_s19 }
 0x143   : > { %p544_p0 = pnand %p1044_p12, %p1043_p8 }
 0x145   : > { %p545_p2 = pneg %p544_p0 }
 0x147   : > { %752 = dma.done.wait (%p545_p2), %s407_s24, 1024  }
 0x148   : > { %754 = vsyncadd (%p545_p2), %s407_s24, 4294966272  ;;  %s19_s14 = sadd.s32 1, %s777_s14   ;;  %s1045_s9 = smov %s761_s10 }
 0x149   : > { %p16_p3 = scmp.ge.s32.totalorder %s19_s14, 4   ;;  %s1046_s10 = smov %s765_s11 }
 0x14a   : > { %s1047_s11 = smov %s900_s15  ;;  %s1048_s12 = smov %s773_s13 }
 0x14b   : > { %s1049_s13 = smov %s1051_s25  ;;  %18 = sbr.rel (!%p16_p3) target bundleno = 7 (0x7), region = 77 }
 0x150   :  { %412 = vsyncpa [#allocation3], 1 }
 0x151   :  { %414 = vsyncpa [#allocation3 + $0x1], 1 }
 0x152   :  { %415 = vsyncpa [#allocation6], 1 }
 0x153   :  { %416 = vsyncpa [#allocation4], 1 }
 0x154   :  { %418 = vsyncpa [#allocation4 + $0x1], 1 }

</bundles_post_ra>
